<compile_context>
chip_gen: v7x
topology: tpu7x:2x2x1
jax: 0.10.0
libtpu: 0.0.40
codegen_flags: <defaults>
</compile_context>

<pallas_src>
import jax
import jax.numpy as jnp
from jax.experimental import pallas as pl
from jax.experimental.pallas import tpu as pltpu

INPUT_SIZE = 2
HIDDEN_SIZE = 2
NUM_CLASSES = 4

LANE = 128            # TPU lane width
MAX_ROWS_BLOCK = 2048  # rows of 128 lanes per grid step (262144 batch elems, ~12 MiB VMEM)


def _cdiv(a, b):
    return -(-a // b)


def mlp_kernel(w1_ref, b1_ref, w2_ref, b2_ref, x_ref, o_ref):
    """x_ref: (INPUT_SIZE, rows, 128) f32 VMEM block (batch dense on sublanes+lanes).
    o_ref: (NUM_CLASSES, rows, 128) f32 VMEM block.
    w1/b1/w2/b2 live in SMEM and are read as scalars -> pure VPU math, no MXU."""
    x0 = x_ref[0]  # (rows, 128) full slab
    x1 = x_ref[1]  # (rows, 128)

    # fc1 + ReLU (hidden_size == 2), float32 on the VPU.
    h0 = jnp.maximum(w1_ref[0, 0] * x0 + w1_ref[1, 0] * x1 + b1_ref[0], 0.0)
    h1 = jnp.maximum(w1_ref[0, 1] * x0 + w1_ref[1, 1] * x1 + b1_ref[1], 0.0)

    # fc2 (num_classes == 4): one dense (rows, 128) slab per class, unmasked stores.
    for c in range(NUM_CLASSES):
        o_ref[c] = w2_ref[0, c] * h0 + w2_ref[1, c] * h1 + b2_ref[c]


def neural_net_forward_fm(xt, w1, b1, w2, b2, max_rows_block=MAX_ROWS_BLOCK):
    """Fast, feature-major contract.

    xt: (INPUT_SIZE, B) float32  ->  (NUM_CLASSES, B) float32.
    Fastest when B is a multiple of 128 (no tail pad / slice at all).
    """
    f, B = xt.shape
    assert f == INPUT_SIZE

    # Tail-pad the batch to a multiple of 128 lanes (at most 127 columns; no-op when
    # B % 128 == 0).  This is the only wrapper-side data movement besides I/O.
    b_pad = _cdiv(B, LANE) * LANE
    if b_pad != B:
        xt = jnp.pad(xt, ((0, 0), (0, b_pad - B)))
    rows = b_pad // LANE

    # Free (row-major compatible) reshape so sublanes are dense in the kernel.
    x3 = xt.reshape(INPUT_SIZE, rows, LANE)

    # Block size: big enough to amortize the ~0.35us per-step pipeline overhead, small
    # enough for every chip's scoped-VMEM default; when the batch allows it, split into
    # >= 2 grid steps so v7x's two TensorCores both get work via "parallel" semantics.
    if rows >= 16:
        rows_blk = min(max_rows_block, _cdiv(_cdiv(rows, 2), 8) * 8)
    else:
        rows_blk = rows  # single block equal to the full array dims
    grid = (_cdiv(rows, rows_blk),)  # partial last block is write-masked by Pallas

    smem = pl.BlockSpec(memory_space=pltpu.MemorySpace.SMEM)
    out3 = pl.pallas_call(
        mlp_kernel,
        out_shape=jax.ShapeDtypeStruct((NUM_CLASSES, rows, LANE), jnp.float32),
        grid=grid,
        in_specs=[
            smem,  # w1 (INPUT_SIZE, HIDDEN)
            smem,  # b1 (HIDDEN,)
            smem,  # w2 (HIDDEN, NUM_CLASSES)
            smem,  # b2 (NUM_CLASSES,)
            pl.BlockSpec((INPUT_SIZE, rows_blk, LANE), lambda i: (0, i, 0)),
        ],
        out_specs=pl.BlockSpec((NUM_CLASSES, rows_blk, LANE), lambda i: (0, i, 0)),
        compiler_params=pltpu.CompilerParams(
            dimension_semantics=("parallel",)),
    )(w1, b1, w2, b2, x3)

    out = out3.reshape(NUM_CLASSES, b_pad)  # free reshape
    if b_pad != B:
        out = out[:, :B]
    return out


def neural_net_forward(x, w1, b1, w2, b2):
    """PyTorch-layout compatibility wrapper: x (B, INPUT_SIZE) -> (B, NUM_CLASSES).

    NOTE: the two transposes here cost extra HBM traffic outside the kernel; prefer
    neural_net_forward_fm (feature-major in/out) for throughput-critical callers.
    """
    return neural_net_forward_fm(x.T, w1, b1, w2, b2).T


def init_params(key):
    """Deterministic init mimicking nn.Linear's uniform(-1/sqrt(fan_in), +1/sqrt(fan_in)).
    Weights stored transposed vs. PyTorch: w1 (in, hidden), w2 (hidden, classes)."""
    k1, k2, k3, k4 = jax.random.split(key, 4)
    bound1 = 1.0 / jnp.sqrt(float(INPUT_SIZE))
    bound2 = 1.0 / jnp.sqrt(float(HIDDEN_SIZE))
    w1 = jax.random.uniform(k1, (INPUT_SIZE, HIDDEN_SIZE), jnp.float32, -bound1, bound1)
    b1 = jax.random.uniform(k2, (HIDDEN_SIZE,), jnp.float32, -bound1, bound1)
    w2 = jax.random.uniform(k3, (HIDDEN_SIZE, NUM_CLASSES), jnp.float32, -bound2, bound2)
    b2 = jax.random.uniform(k4, (NUM_CLASSES,), jnp.float32, -bound2, bound2)
    return w1, b1, w2, b2


if __name__ == "__main__":
    key = jax.random.PRNGKey(0)
    k_x1, k_x2, k_p = jax.random.split(key, 3)
    w1, b1, w2, b2 = init_params(k_p)

    def ref_forward(x):  # plain-JAX reference, same math as the PyTorch forward
        return jnp.maximum(x @ w1 + b1[None, :], 0.0) @ w2 + b2[None, :]

    # 1) Small batch through the PyTorch-layout compatibility wrapper (B=8, like the module).
    B1 = 8
    x_small = jax.random.normal(k_x1, (B1, INPUT_SIZE), jnp.float32)
    out_small = jax.block_until_ready(neural_net_forward(x_small, w1, b1, w2, b2))
    assert out_small.shape == (B1, NUM_CLASSES)
    assert jnp.allclose(out_small, ref_forward(x_small), atol=1e-5, rtol=1e-5)

    # 2) Feature-major fast path with a 2-step grid and a masked partial last block
    #    (B=3200 -> 25 rows of 128 lanes, block = 16 rows).
    B2 = 3200
    xt = jax.random.normal(k_x2, (INPUT_SIZE, B2), jnp.float32)
    out_fm = jax.block_until_ready(neural_net_forward_fm(xt, w1, b1, w2, b2))
    assert out_fm.shape == (NUM_CLASSES, B2)
    assert jnp.allclose(out_fm, ref_forward(xt.T).T, atol=1e-5, rtol=1e-5)

    print("KERNEL_OK")
</pallas_src>

<mosaic_0001>
module attributes {stable_mosaic.version = 11 : i64} {
  func.func @mlp_kernel(%arg0: i32, %arg1: memref<2x2xf32, #tpu.memory_space<smem>>, %arg2: memref<2xf32, #tpu.memory_space<smem>>, %arg3: memref<2x4xf32, #tpu.memory_space<smem>>, %arg4: memref<4xf32, #tpu.memory_space<smem>>, %arg5: memref<2x1x128xf32, #tpu.memory_space<vmem>>, %arg6: memref<4x1x128xf32, #tpu.memory_space<vmem>>) attributes {dimension_semantics = [#tpu.dimension_semantics<parallel>], iteration_bounds = array<i64: 1>, scalar_prefetch = 0 : i64, scratch_operands = 0 : i64, tpu.core_type = #tpu.core_type<tc>, window_params = [{transform_indices = @transform_0, window_bounds = array<i64: 2, 2>}, {transform_indices = @transform_1, window_bounds = array<i64: 2>}, {transform_indices = @transform_2, window_bounds = array<i64: 2, 4>}, {transform_indices = @transform_3, window_bounds = array<i64: 4>}, {transform_indices = @transform_4, window_bounds = array<i64: 2, 1, 128>}, {transform_indices = @transform_5, window_bounds = array<i64: 4, 1, 128>}]} {
    %c0 = arith.constant 0 : index
    %c0_0 = arith.constant 0 : index
    %c0_1 = arith.constant 0 : index
    %0 = vector.load %arg5[%c0, %c0_0, %c0_1] : memref<2x1x128xf32, #tpu.memory_space<vmem>>, vector<1x1x128xf32>
    %1 = vector.shape_cast %0 : vector<1x1x128xf32> to vector<1x128xf32>
    %c1 = arith.constant 1 : index
    %c0_2 = arith.constant 0 : index
    %c0_3 = arith.constant 0 : index
    %2 = vector.load %arg5[%c1, %c0_2, %c0_3] : memref<2x1x128xf32, #tpu.memory_space<vmem>>, vector<1x1x128xf32>
    %3 = vector.shape_cast %2 : vector<1x1x128xf32> to vector<1x128xf32>
    %c0_4 = arith.constant 0 : index
    %c0_5 = arith.constant 0 : index
    %4 = memref.load %arg1[%c0_4, %c0_5] : memref<2x2xf32, #tpu.memory_space<smem>>
    %5 = vector.broadcast %4 : f32 to vector<1x128xf32>
    %6 = arith.mulf %5, %1 : vector<1x128xf32>
    %c1_6 = arith.constant 1 : index
    %c0_7 = arith.constant 0 : index
    %7 = memref.load %arg1[%c1_6, %c0_7] : memref<2x2xf32, #tpu.memory_space<smem>>
    %8 = vector.broadcast %7 : f32 to vector<1x128xf32>
    %9 = arith.mulf %8, %3 : vector<1x128xf32>
    %10 = arith.addf %6, %9 : vector<1x128xf32>
    %c0_8 = arith.constant 0 : index
    %11 = memref.load %arg2[%c0_8] : memref<2xf32, #tpu.memory_space<smem>>
    %12 = vector.broadcast %11 : f32 to vector<1x128xf32>
    %13 = arith.addf %10, %12 : vector<1x128xf32>
    %cst = arith.constant 0.000000e+00 : f32
    %14 = vector.broadcast %cst : f32 to vector<1x128xf32>
    %15 = arith.maximumf %13, %14 : vector<1x128xf32>
    %c0_9 = arith.constant 0 : index
    %c1_10 = arith.constant 1 : index
    %16 = memref.load %arg1[%c0_9, %c1_10] : memref<2x2xf32, #tpu.memory_space<smem>>
    %17 = vector.broadcast %16 : f32 to vector<1x128xf32>
    %18 = arith.mulf %17, %1 : vector<1x128xf32>
    %c1_11 = arith.constant 1 : index
    %c1_12 = arith.constant 1 : index
    %19 = memref.load %arg1[%c1_11, %c1_12] : memref<2x2xf32, #tpu.memory_space<smem>>
    %20 = vector.broadcast %19 : f32 to vector<1x128xf32>
    %21 = arith.mulf %20, %3 : vector<1x128xf32>
    %22 = arith.addf %18, %21 : vector<1x128xf32>
    %c1_13 = arith.constant 1 : index
    %23 = memref.load %arg2[%c1_13] : memref<2xf32, #tpu.memory_space<smem>>
    %24 = vector.broadcast %23 : f32 to vector<1x128xf32>
    %25 = arith.addf %22, %24 : vector<1x128xf32>
    %cst_14 = arith.constant 0.000000e+00 : f32
    %26 = vector.broadcast %cst_14 : f32 to vector<1x128xf32>
    %27 = arith.maximumf %25, %26 : vector<1x128xf32>
    %c0_15 = arith.constant 0 : index
    %c0_16 = arith.constant 0 : index
    %28 = memref.load %arg3[%c0_15, %c0_16] : memref<2x4xf32, #tpu.memory_space<smem>>
    %29 = vector.broadcast %28 : f32 to vector<1x128xf32>
    %30 = arith.mulf %29, %15 : vector<1x128xf32>
    %c1_17 = arith.constant 1 : index
    %c0_18 = arith.constant 0 : index
    %31 = memref.load %arg3[%c1_17, %c0_18] : memref<2x4xf32, #tpu.memory_space<smem>>
    %32 = vector.broadcast %31 : f32 to vector<1x128xf32>
    %33 = arith.mulf %32, %27 : vector<1x128xf32>
    %34 = arith.addf %30, %33 : vector<1x128xf32>
    %c0_19 = arith.constant 0 : index
    %35 = memref.load %arg4[%c0_19] : memref<4xf32, #tpu.memory_space<smem>>
    %36 = vector.broadcast %35 : f32 to vector<1x128xf32>
    %37 = arith.addf %34, %36 : vector<1x128xf32>
    %c0_20 = arith.constant 0 : index
    %c0_21 = arith.constant 0 : index
    %c0_22 = arith.constant 0 : index
    %38 = vector.load %arg6[%c0_20, %c0_21, %c0_22] : memref<4x1x128xf32, #tpu.memory_space<vmem>>, vector<1x1x128xf32>
    %39 = vector.shape_cast %38 : vector<1x1x128xf32> to vector<1x128xf32>
    %40 = vector.shape_cast %37 : vector<1x128xf32> to vector<1x1x128xf32>
    tpu.vector_store %arg6[%c0_20, %c0_21, %c0_22], %40 {strides = array<i32>} : memref<4x1x128xf32, #tpu.memory_space<vmem>>, vector<1x1x128xf32>,
    %c0_23 = arith.constant 0 : index
    %c1_24 = arith.constant 1 : index
    %41 = memref.load %arg3[%c0_23, %c1_24] : memref<2x4xf32, #tpu.memory_space<smem>>
    %42 = vector.broadcast %41 : f32 to vector<1x128xf32>
    %43 = arith.mulf %42, %15 : vector<1x128xf32>
    %c1_25 = arith.constant 1 : index
    %c1_26 = arith.constant 1 : index
    %44 = memref.load %arg3[%c1_25, %c1_26] : memref<2x4xf32, #tpu.memory_space<smem>>
    %45 = vector.broadcast %44 : f32 to vector<1x128xf32>
    %46 = arith.mulf %45, %27 : vector<1x128xf32>
    %47 = arith.addf %43, %46 : vector<1x128xf32>
    %c1_27 = arith.constant 1 : index
    %48 = memref.load %arg4[%c1_27] : memref<4xf32, #tpu.memory_space<smem>>
    %49 = vector.broadcast %48 : f32 to vector<1x128xf32>
    %50 = arith.addf %47, %49 : vector<1x128xf32>
    %c1_28 = arith.constant 1 : index
    %c0_29 = arith.constant 0 : index
    %c0_30 = arith.constant 0 : index
    %51 = vector.load %arg6[%c1_28, %c0_29, %c0_30] : memref<4x1x128xf32, #tpu.memory_space<vmem>>, vector<1x1x128xf32>
    %52 = vector.shape_cast %51 : vector<1x1x128xf32> to vector<1x128xf32>
    %53 = vector.shape_cast %50 : vector<1x128xf32> to vector<1x1x128xf32>
    tpu.vector_store %arg6[%c1_28, %c0_29, %c0_30], %53 {strides = array<i32>} : memref<4x1x128xf32, #tpu.memory_space<vmem>>, vector<1x1x128xf32>,
    %c0_31 = arith.constant 0 : index
    %c2 = arith.constant 2 : index
    %54 = memref.load %arg3[%c0_31, %c2] : memref<2x4xf32, #tpu.memory_space<smem>>
    %55 = vector.broadcast %54 : f32 to vector<1x128xf32>
    %56 = arith.mulf %55, %15 : vector<1x128xf32>
    %c1_32 = arith.constant 1 : index
    %c2_33 = arith.constant 2 : index
    %57 = memref.load %arg3[%c1_32, %c2_33] : memref<2x4xf32, #tpu.memory_space<smem>>
    %58 = vector.broadcast %57 : f32 to vector<1x128xf32>
    %59 = arith.mulf %58, %27 : vector<1x128xf32>
    %60 = arith.addf %56, %59 : vector<1x128xf32>
    %c2_34 = arith.constant 2 : index
    %61 = memref.load %arg4[%c2_34] : memref<4xf32, #tpu.memory_space<smem>>
    %62 = vector.broadcast %61 : f32 to vector<1x128xf32>
    %63 = arith.addf %60, %62 : vector<1x128xf32>
    %c2_35 = arith.constant 2 : index
    %c0_36 = arith.constant 0 : index
    %c0_37 = arith.constant 0 : index
    %64 = vector.load %arg6[%c2_35, %c0_36, %c0_37] : memref<4x1x128xf32, #tpu.memory_space<vmem>>, vector<1x1x128xf32>
    %65 = vector.shape_cast %64 : vector<1x1x128xf32> to vector<1x128xf32>
    %66 = vector.shape_cast %63 : vector<1x128xf32> to vector<1x1x128xf32>
    tpu.vector_store %arg6[%c2_35, %c0_36, %c0_37], %66 {strides = array<i32>} : memref<4x1x128xf32, #tpu.memory_space<vmem>>, vector<1x1x128xf32>,
    %c0_38 = arith.constant 0 : index
    %c3 = arith.constant 3 : index
    %67 = memref.load %arg3[%c0_38, %c3] : memref<2x4xf32, #tpu.memory_space<smem>>
    %68 = vector.broadcast %67 : f32 to vector<1x128xf32>
    %69 = arith.mulf %68, %15 : vector<1x128xf32>
    %c1_39 = arith.constant 1 : index
    %c3_40 = arith.constant 3 : index
    %70 = memref.load %arg3[%c1_39, %c3_40] : memref<2x4xf32, #tpu.memory_space<smem>>
    %71 = vector.broadcast %70 : f32 to vector<1x128xf32>
    %72 = arith.mulf %71, %27 : vector<1x128xf32>
    %73 = arith.addf %69, %72 : vector<1x128xf32>
    %c3_41 = arith.constant 3 : index
    %74 = memref.load %arg4[%c3_41] : memref<4xf32, #tpu.memory_space<smem>>
    %75 = vector.broadcast %74 : f32 to vector<1x128xf32>
    %76 = arith.addf %73, %75 : vector<1x128xf32>
    %c3_42 = arith.constant 3 : index
    %c0_43 = arith.constant 0 : index
    %c0_44 = arith.constant 0 : index
    %77 = vector.load %arg6[%c3_42, %c0_43, %c0_44] : memref<4x1x128xf32, #tpu.memory_space<vmem>>, vector<1x1x128xf32>
    %78 = vector.shape_cast %77 : vector<1x1x128xf32> to vector<1x128xf32>
    %79 = vector.shape_cast %76 : vector<1x128xf32> to vector<1x1x128xf32>
    tpu.vector_store %arg6[%c3_42, %c0_43, %c0_44], %79 {strides = array<i32>} : memref<4x1x128xf32, #tpu.memory_space<vmem>>, vector<1x1x128xf32>,
    return
  }
  func.func @transform_0(%arg0: i32) -> (i32, i32) {
    %c0_i32 = arith.constant 0 : i32
    %c0_i32_0 = arith.constant 0 : i32
    %c0_i32_1 = arith.constant 0 : i32
    return %c0_i32, %c0_i32_0 : i32, i32
  }
  func.func @transform_1(%arg0: i32) -> i32 {
    %c0_i32 = arith.constant 0 : i32
    %c0_i32_0 = arith.constant 0 : i32
    return %c0_i32 : i32
  }
  func.func @transform_2(%arg0: i32) -> (i32, i32) {
    %c0_i32 = arith.constant 0 : i32
    %c0_i32_0 = arith.constant 0 : i32
    %c0_i32_1 = arith.constant 0 : i32
    return %c0_i32, %c0_i32_0 : i32, i32
  }
  func.func @transform_3(%arg0: i32) -> i32 {
    %c0_i32 = arith.constant 0 : i32
    %c0_i32_0 = arith.constant 0 : i32
    return %c0_i32 : i32
  }
  func.func @transform_4(%arg0: i32) -> (i32, i32, i32) {
    %c0_i32 = arith.constant 0 : i32
    %c0_i32_0 = arith.constant 0 : i32
    %c0_i32_1 = arith.constant 0 : i32
    return %c0_i32, %arg0, %c0_i32_0 : i32, i32, i32
  }
  func.func @transform_5(%arg0: i32) -> (i32, i32, i32) {
    %c0_i32 = arith.constant 0 : i32
    %c0_i32_0 = arith.constant 0 : i32
    %c0_i32_1 = arith.constant 0 : i32
    return %c0_i32, %arg0, %c0_i32_0 : i32, i32, i32
  }
}

</mosaic_0001>

<bundles_post_ra>
// kernel: tpu_custom_call.1
= control target key start
LH: loop header
LB: loop body
LE: loop exit
PB: predicated region body
PF: predicated region fallthrough
CT: control target
= control target key end

     0   :  { %10 = vsyncpa [#allocation4], 0  ;;  %s365_s0 = inlined_call_operand.hbm [shape: f32[2,2], index: 0, kind: input, shape index: {}]   ;;  %s366_s1 = inlined_call_operand.vmem [shape: f32[2], index: 1, kind: input, shape index: {}]   ;;  %s367_s2 = inlined_call_operand.vmem [shape: f32[2,4], index: 2, kind: input, shape index: {}]   ;;  %s368_s3 = inlined_call_operand.vmem [shape: f32[4], index: 3, kind: input, shape index: {}]   ;;  %s369_s4 = inlined_call_operand.vmem [shape: f32[2,1,128], index: 4, kind: input, shape index: {}]   ;;  %s370_s5 = inlined_call_operand.hbm [shape: f32[4,1,128], index: 5, kind: output, shape index: {}]  }
   0x1   :  { %11 = vsyncpa [#allocation5], 0 }
   0x2   :  { %12 = vsyncpa [#allocation8], 0  ;;  %s38_s20 = sshll.u32 %s367_s2, 4  ;;  %s39_s20 = int_to_ptr.vmem [resolvable:$true] %s38_s20 }
   0x3   :  { %13 = vsyncpa [#allocation3], 0  ;;  %s180_s21 = scalar_lea.vmem %s39_s20, 32  ;;  %p185_p1 = scmp.lt.s32.totalorder %s39_s20, %s39_s20 }
   0x4   :  { %p181_p0 = scmp.ne.s32.totalorder %s39_s20, %s180_s21  ;;  %p186_p2 = scmp.lt.s32.totalorder %s180_s21, %s180_s21 }
   0x6   :  { %p187_p3 = por %p186_p2, %p185_p1 }
   0x8   :  { %p188_p4 = pnand %p187_p3, %p181_p0 }
   0xa   :  { %191 = shalt.err (!%p188_p4)
}
   0xb   :  { %s256_s22 = smov [#allocation7]   ;;  %s192_s25 = scalar_lea.hbm %s365_s0, 32 }
   0xc   :  { %41 = dma.vmem_to_smem %s39_s20, 32, %s256_s22, [#allocation8]  }
   0xd   :  { %p193_p5 = scmp.ne.s32.totalorder %s365_s0, %s192_s25  ;;  %p196_p6 = scmp.lt.u32.totalorder %s192_s25, %s365_s0 }
   0xf   :  { %p198_p7 = pnand %p196_p6, %p193_p5 }
  0x11   :  { %201 = shalt.err (!%p198_p7)
}
  0x12   :  { %s257_s29 = smov [#allocation2]   ;;  %s28_s9 = sshll.u32 %s366_s1, 4  ;;  %s29_s9 = int_to_ptr.vmem [resolvable:$true] %s28_s9 }
  0x13   :  { %21 = dma.hbm_to_smem %s365_s0, 32, %s257_s29, [#allocation4]  }
  0x14   :  { %s48_s12 = sshll.u32 %s368_s3, 4  ;;  %s202_s13 = scalar_lea.vmem %s29_s9, 16  ;;  %s49_s12 = int_to_ptr.vmem [resolvable:$true] %s48_s12 }
  0x15   :  { %p203_p8 = scmp.ne.s32.totalorder %s29_s9, %s202_s13  ;;  %p207_p9 = scmp.lt.s32.totalorder %s29_s9, %s29_s9 }
  0x16   :  { %p208_p10 = scmp.lt.s32.totalorder %s202_s13, %s202_s13 }
  0x18   :  { %p209_p11 = por %p208_p10, %p207_p9 }
  0x1a   :  { %p210_p12 = pnand %p209_p11, %p203_p8 }
  0x1c   :  { %213 = shalt.err (!%p210_p12)
}
  0x1d   :  { %s258_s14 = smov [#allocation6]   ;;  %s214_s0 = scalar_lea.vmem %s49_s12, 16 }
  0x1e   :  { %31 = dma.vmem_to_smem %s29_s9, 16, %s258_s14, [#allocation5]  }
  0x1f   :  { %p215_p13 = scmp.ne.s32.totalorder %s49_s12, %s214_s0  ;;  %p219_p0 = scmp.lt.s32.totalorder %s49_s12, %s49_s12 }
  0x20   :  { %p220_p1 = scmp.lt.s32.totalorder %s214_s0, %s214_s0 }
  0x22   :  { %p221_p2 = por %p220_p1, %p219_p0 }
  0x24   :  { %p222_p3 = pnand %p221_p2, %p215_p13 }
  0x26   :  { %225 = shalt.err (!%p222_p3)
}
  0x27   :  { %s259_s1 = smov [#allocation9]  }
  0x28   :  { %51 = dma.vmem_to_smem %s49_s12, 16, %s259_s1, [#allocation8]  }
  0x29   :  { %248 = dma.done.wait [#allocation4], 32  }
  0x2a   :  { %249 = vsyncadd [#allocation4], 4294967264 }
  0x2b   :  { %250 = dma.done.wait [#allocation5], 16  }
  0x2c   :  { %251 = vsyncadd [#allocation5], 4294967280 }
  0x2d   :  { %252 = dma.done.wait [#allocation8], 48  }
  0x2e   :  { %253 = vsyncadd [#allocation8], 4294967248 }
  0x2f   :  { %66 = sfence }
  0x30   :  { %s70_s3 = sld [smem:[#allocation2]]  ;;  %s160_s17 = sld [smem:[#allocation2 + $0x1]]  ;;  %v67_v0 = vld [vmem:[%s369_s4] sm:$0x1]  ;;  %v158_v1 = vld [vmem:[%s369_s4 + $0x1] sm:$0x1] }
  0x31   :  { %s159_s15 = sld [smem:[#allocation2 + $0x80]]  ;;  %s161_s18 = sld [smem:[#allocation2 + $0x81]] }
  0x32   :  { %s77_s16 = sld [smem:[#allocation6]]  ;;  %s314_s19 = sld [smem:[#allocation6 + $0x1]] }
  0x33   :  { %s319_s22 = sld [smem:[#allocation7]]  ;;  %s326_s26 = sld [smem:[#allocation7 + $0x1]] }
  0x34   :  { %s321_s23 = sld [smem:[#allocation7 + $0x80]]  ;;  %s328_s27 = sld [smem:[#allocation7 + $0x81]] }
  0x35   :  { %s330_s2 = sld [smem:[#allocation7 + $0x2]]  ;;  %s170_s29 = sld [smem:[#allocation7 + $0x3]] }
  0x36   :  { %v71_v2 = vstv %s70_s3  ;;  %s332_s28 = sld [smem:[#allocation7 + $0x82]]  ;;  %v82_v6 = vstv %s160_s17  ;;  %s171_s4 = sld [smem:[#allocation7 + $0x83]] }
  0x37   :  { %v72_v3 = vmul.f32 %v71_v2, %v67_v0  ;;  %v74_v4 = vstv %s159_s15  ;;  %v85_v7 = vstv %s161_s18  ;;  %v83_v9 = vmul.f32 %v82_v6, %v67_v0  ;;  %s334_s30 = sld [smem:[#allocation9]]  ;;  %s336_s6 = sld [smem:[#allocation9 + $0x1]] }
  0x38   :  { %v75_v5 = vmul.f32 %v158_v1, %v74_v4  ;;  %v78_v8 = vstv %s77_s16  ;;  %v86_v10 = vmul.f32 %v158_v1, %v85_v7  ;;  %v89_v12 = vstv %s314_s19  ;;  %s339_s7 = sld [smem:[#allocation9 + $0x2]]  ;;  %s341_s8 = sld [smem:[#allocation9 + $0x3]] }
  0x39   :  { %v93_v15 = vstv %s319_s22  ;;  %v104_v18 = vstv %s326_s26  ;;  %s260_s9 = smov [#allocation10]  }
  0x3a   :  { %v76_v11 = vadd.f32 %v75_v5, %v72_v3  ;;  %v87_v13 = vadd.f32 %v86_v10, %v83_v9  ;;  %v96_v16 = vstv %s321_s23  ;;  %v107_v19 = vstv %s328_s27  ;;  %s144_s10 = sshll.u32 %s260_s9, 4  ;;  %s145_s10 = int_to_ptr.vmem [resolvable:$true] %s144_s10 }
  0x3b   :  { %v116_v20 = vstv %s330_s2  ;;  %v128_v23 = vstv %s170_s29  ;;  %s226_s11 = scalar_lea.vmem %s145_s10, 64  ;;  %p231_p5 = scmp.lt.s32.totalorder %s145_s10, %s145_s10 }
  0x3c   :  { %v79_v14 = vadd.f32 %v78_v8, %v76_v11  ;;  %v90_v17 = vadd.f32 %v89_v12, %v87_v13  ;;  %v119_v22 = vstv %s332_s28  ;;  %v131_v24 = vstv %s171_s4  ;;  %p227_p4 = scmp.ne.s32.totalorder %s145_s10, %s226_s11  ;;  %p232_p6 = scmp.lt.s32.totalorder %s226_s11, %s226_s11 }
  0x3d   :  { %v100_v34 = vstv %s334_s30  ;;  %v111_v35 = vstv %s336_s6 }
  0x3e   :  { %v80_v21 = vmax.f32 %v79_v14, 0.0  ;;  %v91_v25 = vmax.f32 %v90_v17, 0.0  ;;  %v123_v36 = vstv %s339_s7  ;;  %v135_v37 = vstv %s341_s8  ;;  %p233_p7 = por %p232_p6, %p231_p5 }
  0x40   :  { %v94_v26 = vmul.f32 %v93_v15, %v80_v21  ;;  %v105_v27 = vmul.f32 %v104_v18, %v80_v21  ;;  %v117_v28 = vmul.f32 %v116_v20, %v80_v21  ;;  %v129_v29 = vmul.f32 %v128_v23, %v80_v21  ;;  %p234_p8 = pnand %p233_p7, %p227_p4 }
  0x41   :  { %v97_v30 = vmul.f32 %v96_v16, %v91_v25  ;;  %v108_v31 = vmul.f32 %v107_v19, %v91_v25  ;;  %v120_v32 = vmul.f32 %v119_v22, %v91_v25  ;;  %v132_v33 = vmul.f32 %v131_v24, %v91_v25 }
  0x43   :  { %v98_v38 = vadd.f32 %v97_v30, %v94_v26  ;;  %v109_v39 = vadd.f32 %v108_v31, %v105_v27  ;;  %v121_v40 = vadd.f32 %v120_v32, %v117_v28  ;;  %v133_v41 = vadd.f32 %v132_v33, %v129_v29 }
  0x45   :  { %v101_v42 = vadd.f32 %v100_v34, %v98_v38  ;;  %v112_v43 = vadd.f32 %v111_v35, %v109_v39  ;;  %v124_v44 = vadd.f32 %v123_v36, %v121_v40  ;;  %v136_v45 = vadd.f32 %v135_v37, %v133_v41 }
  0x47   :  { %102 = vst [vmem:[#allocation10] sm:$0x1] %v101_v42  ;;  %114 = vst [vmem:[#allocation10 + $0x1] sm:$0x1] %v112_v43 }
  0x48   :  { %126 = vst [vmem:[#allocation10 + $0x2] sm:$0x1] %v124_v44  ;;  %138 = vst [vmem:[#allocation10 + $0x3] sm:$0x1] %v136_v45 }
  0x49   :  { %237 = shalt.err (!%p234_p8)
}
  0x4a   :  { %s238_s14 = scalar_lea.hbm %s370_s5, 64 }
  0x4b   :  { %p239_p9 = scmp.ne.s32.totalorder %s370_s5, %s238_s14  ;;  %p242_p10 = scmp.lt.u32.totalorder %s238_s14, %s370_s5 }
  0x4d   :  { %p244_p11 = pnand %p242_p10, %p239_p9 }
  0x4f   :  { %247 = shalt.err (!%p244_p11)
}
  0x50   :  { %s261_s16 = smov 16   ;;  %s262_s17 = smov 1  }
  0x51   :  { %150 = dma.vmem_to_hbm [thread:$0]  %s145_s10, 64, %s370_s5, [#allocation3], %s261_s16, %s261_s16, %s262_s17  }
  0x52   :  { %254 = dma.done.wait [#allocation3], 64  }
  0x53   :  { %255 = vsyncadd [#allocation3], 4294967232 }
  0x54   :  { %154 = vsyncpa [#allocation3], 1 }
  0x55   :  { %155 = vsyncpa [#allocation4], 1 }
  0x56   :  { %156 = vsyncpa [#allocation5], 1 }
  0x57   :  { %157 = vsyncpa [#allocation8], 1 }

</bundles_post_ra>
